<compile_context>
chip_gen: v7x
topology: tpu7x:2x2x1
jax: 0.10.0
libtpu: 0.0.40
codegen_flags: <defaults>
</compile_context>

<pallas_src>
import functools

import jax
import jax.numpy as jnp
from jax import lax
from jax.experimental import pallas as pl
from jax.experimental.pallas import tpu as pltpu


def _round_up(x, m):
    return (x + m - 1) // m * m


def _vmem_capacity_bytes():
    """Physical VMEM per TensorCore (falls back to the v7x 64 MiB minimum)."""
    try:
        cap = int(pltpu.get_tpu_info().vmem_capacity_bytes)
        if cap > 0:
            return cap
    except Exception:
        pass
    return 64 << 20


# ---------------------------------------------------------------------------
# Path A: small/medium vocabulary -> one-hot MXU matmul, table resident in VMEM.
# ---------------------------------------------------------------------------
def _embed_onehot_kernel(ids_ref, table_ref, out_ref):
    # ids_ref   : VMEM (tpb, 1)  int32   -- this block's token ids
    # table_ref : VMEM (V, Dp)           -- full table (constant block index)
    # out_ref   : VMEM (tpb, Dp)
    tpb = out_ref.shape[0]
    vocab = table_ref.shape[0]
    ids = ids_ref[...]                                             # (tpb, 1)
    vocab_iota = lax.broadcasted_iota(jnp.int32, (tpb, vocab), 1)  # (tpb, V)
    one_hot = (ids == vocab_iota).astype(table_ref.dtype)
    out_ref[...] = jnp.dot(
        one_hot, table_ref[...], preferred_element_type=jnp.float32
    ).astype(out_ref.dtype)


def _embed_small_vocab(flat_ids, table, tpb, vmem_limit):
    n_padded = flat_ids.shape[0]
    vocab, d_pad = table.shape
    return pl.pallas_call(
        _embed_onehot_kernel,
        out_shape=jax.ShapeDtypeStruct((n_padded, d_pad), table.dtype),
        grid=(n_padded // tpb,),
        in_specs=[
            pl.BlockSpec((tpb, 1), lambda i: (i, 0)),
            # Full table, constant block index -> fetched once, stays resident.
            # TODO(synk): pipeline_mode=pl.Buffered(1) would halve the resident
            # footprint on 64 MiB v7x; we budget 2x table_bytes in the threshold
            # instead and keep the default (well-trodden) pipelining path.
            pl.BlockSpec((vocab, d_pad), lambda i: (0, 0)),
        ],
        out_specs=pl.BlockSpec((tpb, d_pad), lambda i: (i, 0)),
        compiler_params=pltpu.CompilerParams(
            dimension_semantics=("parallel",),   # v7x: token blocks across both TCs
            vmem_limit_bytes=vmem_limit,
        ),
    )(flat_ids.reshape(n_padded, 1), table)


# ---------------------------------------------------------------------------
# Path B: general vocabulary -> HBM table, deep-pipelined grouped DMA row gather.
# ---------------------------------------------------------------------------
_ROWS_PER_GROUP = 8  # one sublane group -> unmasked (8, Dp) stores


def _embed_gather_kernel(ids_ref, table_hbm, out_ref, row_buf, sems, *,
                         tokens_per_block, n_buf):
    # ids_ref   : SMEM (n_padded,) int32  -- scalar-prefetched flat token ids
    # table_hbm : HBM  (V, 1, Dp)         -- raw ref; rows fetched by manual DMA
    # out_ref   : VMEM (tpb, Dp)
    # row_buf   : VMEM (n_buf, 8, Dp)     -- staging tiles, one 8-row group each
    # sems      : DMA  (n_buf,)           -- one counting semaphore per group slot
    tpb = tokens_per_block
    n_groups = tpb // _ROWS_PER_GROUP
    n_total = ids_ref.shape[0]
    block_base = pl.program_id(0) * tpb

    def row_copy(slot, r, tok):
        return pltpu.make_async_copy(
            table_hbm.at[tok],                         # (1, Dp) row in HBM
            row_buf.at[slot, pl.ds(r, 1), :],          # sublane r of the group tile
            sems.at[slot],
        )

    def issue_group(slot, toks):
        for r in range(_ROWS_PER_GROUP):               # static unroll
            row_copy(slot, r, toks[r]).start()

    def wait_group(slot):
        for r in range(_ROWS_PER_GROUP):               # static unroll
            row_copy(slot, r, 0).wait()

    # Prime the pipeline: up to n_buf groups (n_buf * 8 rows) in flight.
    for g in range(min(n_buf, n_groups)):               # static
        base = block_base + g * _ROWS_PER_GROUP
        issue_group(g, [ids_ref[base + r] for r in range(_ROWS_PER_GROUP)])

    def body(g, carry):
        slot = g & (n_buf - 1)                           # n_buf is a power of two
        if n_groups > n_buf:                             # static
            # Scalar id reads for the refill group, hoisted above the DMA waits
            # (keeps the scalar path moving).  Clamped so the reads stay in
            # bounds when the refill below is disabled by pl.when.
            refill_base = jnp.minimum(
                block_base + (g + n_buf) * _ROWS_PER_GROUP,
                n_total - _ROWS_PER_GROUP)
            refill_toks = [ids_ref[refill_base + r]
                           for r in range(_ROWS_PER_GROUP)]
        wait_group(slot)
        dst = pl.multiple_of(g * _ROWS_PER_GROUP, _ROWS_PER_GROUP)
        # Single unmasked (8, Dp) store (full sublanes), sublane-aligned start.
        out_ref[pl.ds(dst, _ROWS_PER_GROUP), :] = row_buf[slot]
        if n_groups > n_buf:                             # static
            @pl.when(g + n_buf < n_groups)
            def _():
                issue_group(slot, refill_toks)
        return carry

    lax.fori_loop(0, n_groups, body, 0, unroll=2)


def _embed_gather(flat_ids, table, tpb, n_buf, vmem_limit):
    n_padded = flat_ids.shape[0]
    vocab, d_pad = table.shape
    kernel = functools.partial(
        _embed_gather_kernel, tokens_per_block=tpb, n_buf=n_buf)
    # TODO(synk): for very large token counts (>~100K) switch the ids to a
    # per-block SMEM input (pl.BlockSpec((tpb,), ..., memory_space=pltpu.SMEM))
    # to bound SMEM; whole-array scalar prefetch is kept here for lowering safety.
    return pl.pallas_call(
        kernel,
        out_shape=jax.ShapeDtypeStruct((n_padded, d_pad), table.dtype),
        grid_spec=pltpu.PrefetchScalarGridSpec(
            num_scalar_prefetch=1,                       # flat_ids -> SMEM
            grid=(n_padded // tpb,),
            in_specs=[pl.BlockSpec(memory_space=pl.ANY)],  # table stays in HBM
            out_specs=pl.BlockSpec((tpb, d_pad), lambda i, ids: (i, 0)),
            scratch_shapes=[
                pltpu.VMEM((n_buf, _ROWS_PER_GROUP, d_pad), table.dtype),
                pltpu.SemaphoreType.DMA((n_buf,)),
            ],
        ),
        compiler_params=pltpu.CompilerParams(
            dimension_semantics=("parallel",),
            vmem_limit_bytes=vmem_limit,
        ),
    )(flat_ids, table.reshape(vocab, 1, d_pad))


# ---------------------------------------------------------------------------
# Public wrapper: out = table[ids], shape ids.shape + (D,)
# ---------------------------------------------------------------------------
def embedder_forward(ids, table, *, tokens_per_block=None, groups_in_flight=4,
                     vocab_cap=None, max_resident_table_bytes=None):
    lead_shape = ids.shape
    vocab, emb_dim = table.shape
    out_dtype = table.dtype
    itemsize = jnp.dtype(table.dtype).itemsize

    # Clamp ids (torch.nn.Embedding errors on OOB; we clamp to stay safe).
    flat_ids = jnp.clip(ids.reshape(-1).astype(jnp.int32), 0, vocab - 1)
    n_tokens = flat_ids.shape[0]
    if n_tokens == 0:
        return jnp.zeros((*lead_shape, emb_dim), out_dtype)

    # Path B gathers 32-bit rows (avoids sub-sublane DMA scatter for <32-bit
    # dtypes); pad D so both the native and the packed 32-bit view are
    # lane-dense (multiples of 128 lanes).
    pack = max(1, 4 // itemsize)
    d_pad = _round_up(emb_dim, 128 * pack)
    if d_pad != emb_dim:
        table = jnp.pad(table, ((0, 0), (0, d_pad - emb_dim)))
    row_bytes = d_pad * itemsize

    vmem_cap = _vmem_capacity_bytes()
    # ~75% of physical, with >= 8 MiB headroom (≈48 MiB on v7x, 96 MiB on v5e/v6e).
    vmem_budget = max(16 << 20, min(vmem_cap * 3 // 4, vmem_cap - (8 << 20)))

    # Adaptive token-block size: keep the double-buffered output tile within
    # ~half the budget; wider blocks for small rows to amortize grid-step cost.
    tpb_cap = max(8, (vmem_budget // (4 * row_bytes)) // 8 * 8)
    if tokens_per_block is None:
        tpb_target = 512 if row_bytes <= 2048 else 256
    else:
        tpb_target = _round_up(int(tokens_per_block), 8)
    tpb_b = max(8, min(tpb_target, tpb_cap, _round_up(n_tokens, 8)))
    tpb_a = min(tpb_b, 256)        # bounds the (tpb, V) one-hot temporaries

    table_bytes = vocab * row_bytes
    if vocab_cap is None:
        # One-hot MXU gather beats the random-row DMA gather well past 2K rows
        # on v6e/v7x; f32 tables (multi-pass MXU on v5e) get a lower cap.
        vocab_cap = 8192 if itemsize <= 2 else 4096
    if max_resident_table_bytes is None:
        max_resident_table_bytes = vmem_budget // 4   # 2x-buffered table <= budget/2

    out_tile_a = tpb_a * row_bytes
    path_a_bytes = (2 * table_bytes + 2 * out_tile_a + 2 * tpb_a * 4
                    + 3 * tpb_a * vocab * 4)          # one-hot/iota temporaries
    use_onehot = (vocab <= vocab_cap
                  and table_bytes <= max_resident_table_bytes
                  and path_a_bytes + (2 << 20) <= vmem_budget)

    tpb = tpb_a if use_onehot else tpb_b
    n_padded = _round_up(n_tokens, tpb)
    if n_padded != n_tokens:
        flat_ids = jnp.pad(flat_ids, (0, n_padded - n_tokens))  # pad with valid id 0

    if use_onehot:
        vmem_limit = max(16 << 20, min(path_a_bytes + (4 << 20), vmem_budget))
        out_flat = _embed_small_vocab(flat_ids, table, tpb, vmem_limit)
    else:
        if pack > 1:
            # Bitcast-pack `pack` narrow elements into one uint32 lane so the
            # gather moves 32-bit words (exact: a pure byte shuffle).
            table32 = lax.bitcast_convert_type(
                table.reshape(vocab, d_pad // pack, pack), jnp.uint32)
        else:
            table32 = table
        d32 = table32.shape[1]
        n_buf = min(int(groups_in_flight),
                    1 << max(0, (tpb // _ROWS_PER_GROUP).bit_length() - 1))
        n_buf = max(1, 1 << (n_buf.bit_length() - 1))   # power of two
        path_b_bytes = (2 * tpb + n_buf * _ROWS_PER_GROUP) * d32 * 4
        vmem_limit = max(16 << 20, min(path_b_bytes + (4 << 20), vmem_budget))
        out32 = _embed_gather(flat_ids, table32, tpb, n_buf, vmem_limit)
        if pack > 1:
            out_flat = lax.bitcast_convert_type(out32, out_dtype)
            out_flat = out_flat.reshape(n_padded, d_pad)
        else:
            out_flat = out32

    out = out_flat[:n_tokens, :emb_dim]
    return out.reshape(*lead_shape, emb_dim)


if __name__ == "__main__":
    key = jax.random.PRNGKey(0)
    k_table, k_ids, k_ids2 = jax.random.split(key, 3)

    # Small, deterministic synthetic "vocab.vectors" (the Embedding weight).
    vocab_size, embedding_dim = 64, 128
    batch, seq = 2, 8

    table = jax.random.normal(k_table, (vocab_size, embedding_dim), jnp.float32)
    ids = jax.random.randint(k_ids, (batch, seq), 0, vocab_size, jnp.int32)
    ref = table[ids]  # torch.nn.Embedding(input) == weight[input]

    # Path A: one-hot MXU matmul (small vocab, table resident in VMEM).
    out_a = jax.block_until_ready(embedder_forward(ids, table))
    assert out_a.shape == (batch, seq, embedding_dim)
    assert out_a.dtype == jnp.float32
    assert jnp.allclose(out_a, ref), "one-hot path mismatch"

    # Path B: HBM table + grouped, deep-pipelined DMA row gather (forced).
    out_b = jax.block_until_ready(
        embedder_forward(ids, table, max_resident_table_bytes=0))
    assert jnp.array_equal(out_b, ref), "DMA-gather path mismatch"

    # Larger token count: multi-block grid, block padding, and the steady-state
    # refill of the gather pipeline (n_groups > n_buf).
    ids2 = jax.random.randint(k_ids2, (4, 71), 0, vocab_size, jnp.int32)
    ref2 = table[ids2]
    out_a2 = jax.block_until_ready(embedder_forward(ids2, table))
    assert jnp.allclose(out_a2, ref2), "one-hot path mismatch (multi-block)"
    out_b2 = jax.block_until_ready(
        embedder_forward(ids2, table, max_resident_table_bytes=0))
    assert jnp.array_equal(out_b2, ref2), "DMA-gather path mismatch (refill)"

    # bf16 table exercises the 32-bit packed gather path (exact byte shuffle).
    table_bf16 = table.astype(jnp.bfloat16)
    out_b3 = jax.block_until_ready(
        embedder_forward(ids2, table_bf16, max_resident_table_bytes=0))
    assert out_b3.dtype == jnp.bfloat16
    assert jnp.array_equal(out_b3, table_bf16[ids2]), "packed bf16 gather mismatch"

    print("KERNEL_OK")
</pallas_src>

<mosaic_0001>
module attributes {stable_mosaic.version = 11 : i64} {
  func.func @_embed_onehot_kernel(%arg0: i32, %arg1: memref<16x1xi32, #tpu.memory_space<vmem>>, %arg2: memref<64x128xf32, #tpu.memory_space<vmem>>, %arg3: memref<16x128xf32, #tpu.memory_space<vmem>>) attributes {dimension_semantics = [#tpu.dimension_semantics<parallel>], iteration_bounds = array<i64: 1>, scalar_prefetch = 0 : i64, scratch_operands = 0 : i64, tpu.core_type = #tpu.core_type<tc>, window_params = [{transform_indices = @transform_0, window_bounds = array<i64: 16, 1>}, {pipeline_mode = #tpu.pipeline_mode<synchronous>, transform_indices = @transform_1, window_bounds = array<i64: 64, 128>}, {transform_indices = @transform_2, window_bounds = array<i64: 16, 128>}]} {
    %c0 = arith.constant 0 : index
    %c0_0 = arith.constant 0 : index
    %0 = vector.load %arg1[%c0, %c0_0] : memref<16x1xi32, #tpu.memory_space<vmem>>, vector<16x1xi32>
    %1 = tpu.iota {dimensions = array<i32: 1>} : vector<16x64xi32>
    %2 = vector.broadcast %0 : vector<16x1xi32> to vector<16x64xi32>
    %3 = arith.cmpi eq, %2, %1 : vector<16x64xi32>
    %4 = arith.extui %3 : vector<16x64xi1> to vector<16x64xi32>
    %5 = arith.sitofp %4 : vector<16x64xi32> to vector<16x64xf32>
    %c0_1 = arith.constant 0 : index
    %c0_2 = arith.constant 0 : index
    %6 = vector.load %arg2[%c0_1, %c0_2] : memref<64x128xf32, #tpu.memory_space<vmem>>, vector<64x128xf32>
    %cst = arith.constant dense<0.000000e+00> : vector<16x128xf32>
    %7 = tpu.matmul %5, %6, %cst {dimension_numbers = #tpu.dot_dimension_numbers<[1], [0], [0], [1], [0, 0, 1, 1], [], []>} : vector<16x64xf32>, vector<64x128xf32>, vector<16x128xf32> -> vector<16x128xf32>
    %c0_3 = arith.constant 0 : index
    %c0_4 = arith.constant 0 : index
    %8 = vector.load %arg3[%c0_3, %c0_4] : memref<16x128xf32, #tpu.memory_space<vmem>>, vector<16x128xf32>
    tpu.vector_store %arg3[%c0_3, %c0_4], %7 {strides = array<i32>} : memref<16x128xf32, #tpu.memory_space<vmem>>, vector<16x128xf32>,
    return
  }
  func.func @transform_0(%arg0: i32) -> (i32, i32) {
    %c0_i32 = arith.constant 0 : i32
    %c0_i32_0 = arith.constant 0 : i32
    return %arg0, %c0_i32 : i32, i32
  }
  func.func @transform_1(%arg0: i32) -> (i32, i32) {
    %c0_i32 = arith.constant 0 : i32
    %c0_i32_0 = arith.constant 0 : i32
    %c0_i32_1 = arith.constant 0 : i32
    return %c0_i32, %c0_i32_0 : i32, i32
  }
  func.func @transform_2(%arg0: i32) -> (i32, i32) {
    %c0_i32 = arith.constant 0 : i32
    %c0_i32_0 = arith.constant 0 : i32
    return %arg0, %c0_i32 : i32, i32
  }
}

</mosaic_0001>

<bundles_post_ra>
// kernel: tpu_custom_call.1
= control target key start
LH: loop header
LB: loop body
LE: loop exit
PB: predicated region body
PF: predicated region fallthrough
CT: control target
= control target key end

     0   :  { %7 = vsyncpa [#allocation3], 0  ;;  %s312_s0 = inlined_call_operand.vmem [shape: s32[16,1], index: 0, kind: input, shape index: {}]   ;;  %s313_s1 = inlined_call_operand.hbm [shape: f32[64,128], index: 1, kind: input, shape index: {}]   ;;  %s314_s2 = inlined_call_operand.hbm [shape: f32[16,128], index: 2, kind: output, shape index: {}]  }
   0x1   :  { %8 = vsyncpa [#allocation4], 0  ;;  %s255_s9 = smov [#allocation2]   ;;  %s207_s13 = scalar_lea.hbm %s313_s1, 1024 }
   0x2   :  { %s16_s10 = sshll.u32 %s255_s9, 4  ;;  %p208_p0 = scmp.ne.s32.totalorder %s313_s1, %s207_s13  ;;  %s17_s10 = int_to_ptr.vmem [resolvable:$true] %s16_s10 }
   0x3   :  { %p211_p1 = scmp.lt.u32.totalorder %s207_s13, %s313_s1 }
   0x5   :  { %p213_p2 = pnand %p211_p1, %p208_p0 }
   0x7   :  { %216 = shalt.err (!%p213_p2)
}
   0x8   :  { %s217_s18 = scalar_lea.vmem %s17_s10, 1024  ;;  %p222_p4 = scmp.lt.s32.totalorder %s17_s10, %s17_s10 }
   0x9   :  { %p218_p3 = scmp.ne.s32.totalorder %s17_s10, %s217_s18  ;;  %p223_p5 = scmp.lt.s32.totalorder %s217_s18, %s217_s18 }
   0xb   :  { %p224_p6 = por %p223_p5, %p222_p4 }
   0xd   :  { %p225_p7 = pnand %p224_p6, %p218_p3 }
   0xf   :  { %228 = shalt.err (!%p225_p7)
}
  0x10   :  { %s256_s19 = smov 128   ;;  %s257_s20 = smov 8  }
  0x11   :  { %22 = dma.hbm_to_vmem [thread:$0]  %s313_s1, 1024, %s17_s10, [#allocation3], %s256_s19, %s256_s19, %s257_s20  }
  0x12   :  { %251 = dma.done.wait [#allocation3], 1024  }
  0x13   :  { %252 = vsyncadd [#allocation3], 4294966272  ;;  %v258_v0 = vmov 0   ;;  %v26_v1 = vld [vmem:[%s312_s0] sm:$0xff]  ;;  %v43_v3 = vld [vmem:[#allocation2 + $0x8] sm:$0xff]  ;;  %v28_v15 = vlaneseq  ;;  %vm50_vm0 = vcmask 523264  }
  0x14   :  { %206 = vset.pattern.permute.xlu0 %v258_v0  ;;  %v42_v2 = vld [vmem:[#allocation2] sm:$0xff]  ;;  %v44_v4 = vld [vmem:[#allocation2 + $0x10] sm:$0xff]  ;;  %v45_v5 = vld [vmem:[#allocation2 + $0x18] sm:$0xff]  ;;  %v259_v18 = vmov 0.0  }
  0x15   :  { %31 = vperm.xlu0 %206, %v26_v1   ;;  %v27_v6 = vld [vmem:[%s312_s0 + $0x8] sm:$0xff]  ;;  %v184_v7 = vpack.c.bf16 %v43_v3, %v42_v2  ;;  %v188_v8 = vpack.c.bf16 %v45_v5, %v44_v4  ;;  %v46_v9 = vld [vmem:[#allocation2 + $0x20] sm:$0xff]  ;;  %v48_v12 = vld [vmem:[#allocation2 + $0x30] sm:$0xff]  ;;  %v29_v16 = vand.u32 127, %v28_v15  ;;  %s260_s0 = smov [#allocation5]  }
  0x16   :  { %v47_v10 = vld [vmem:[#allocation2 + $0x28] sm:$0xff]  ;;  %v49_v13 = vld [vmem:[#allocation2 + $0x38] sm:$0xff]  ;;  %s139_s1 = sshll.u32 %s260_s0, 4  ;;  %s140_s1 = int_to_ptr.vmem [resolvable:$true] %s139_s1 }
  0x17   :  { %185 = vmatprep.subr.bf16.mxu0 %v184_v7  ;;  %v192_v11 = vpack.c.bf16 %v47_v10, %v46_v9  ;;  %v196_v14 = vpack.c.bf16 %v49_v13, %v48_v12  ;;  %s229_s27 = scalar_lea.vmem %s140_s1, 256  ;;  %p234_p9 = scmp.lt.s32.totalorder %s140_s1, %s140_s1 }
  0x18   :  { %187 = vmatpush3.bf16.msra.mxu0 %v184_v7  ;;  %p230_p8 = scmp.ne.s32.totalorder %s140_s1, %s229_s27  ;;  %p235_p10 = scmp.lt.s32.totalorder %s229_s27, %s229_s27 }
  0x19   :  { %34 = vperm.xlu0 %206, %v27_v6   ;;  %189 = vmatprep.subr.bf16.mxu0 %v188_v8 }
  0x1a   :  { %p236_p11 = por %p235_p10, %p234_p9 }
  0x1c   :  { %191 = vmatpush3.bf16.msra.mxu0 %v188_v8  ;;  %p237_p12 = pnand %p236_p11, %p230_p8 }
  0x1d   :  { %193 = vmatprep.subr.bf16.mxu0 %v192_v11 }
  0x20   :  { %195 = vmatpush3.bf16.msra.mxu0 %v192_v11 }
  0x21   :  { %197 = vmatprep.subr.bf16.mxu0 %v196_v14 }
  0x24   :  { %199 = vmatpush3.bf16.msra.mxu0 %v196_v14 }
  0x94   :  { %v32_v17 = vpop.permute.xlu0 %31 }
  0x95   :  { %vm36_vm1 = vcmp.eq.s32.totalorder %v32_v17, %v29_v16 }
  0x96   :  { %v151_v19 = vsel %vm36_vm1, 1.0, %v259_v18 }
  0x97   :  { %181 = vmatprep.mubr.msk.f32.mxu0 %vm50_vm0, %v151_v19 }
  0x98   :  { %v35_v20 = vpop.permute.xlu0 %34 }
  0x99   :  { %vm37_vm2 = vcmp.eq.s32.totalorder %v35_v20, %v29_v16 }
  0x9a   :  { %v152_v21 = vsel %vm37_vm2, 1.0, %v259_v18 }
  0x9b   :  { %182 = vmatmul.mubr.msk.f32.vlgmr.msra.gmra.mrb[0].mxu0 %vm50_vm0, %v152_v21 }
 0x16e   :  { %v183_v22 = vpop.f32.mrb[0].mxu0 }
 0x16f   :  { %133 = vst [vmem:[#allocation5 + $0x8] sm:$0xff] %v183_v22  ;;  %v123_v23 = vpop.f32.mrb[1].mxu0 }
 0x170   :  { %132 = vst [vmem:[#allocation5] sm:$0xff] %v123_v23 }
 0x171   :  { %240 = shalt.err (!%p237_p12)
}
 0x172   :  { %s241_s30 = scalar_lea.hbm %s314_s2, 256 }
 0x173   :  { %p242_p13 = scmp.ne.s32.totalorder %s314_s2, %s241_s30  ;;  %p245_p0 = scmp.lt.u32.totalorder %s241_s30, %s314_s2 }
 0x175   :  { %p247_p1 = pnand %p245_p0, %p242_p13 }
 0x177   :  { %250 = shalt.err (!%p247_p1)
}
 0x178   :  { %145 = dma.vmem_to_hbm [thread:$0]  %s140_s1, 256, %s314_s2, [#allocation4], %s256_s19, %s256_s19, %s257_s20  }
 0x179   :  { %253 = dma.done.wait [#allocation4], 256  }
 0x17a   :  { %254 = vsyncadd [#allocation4], 4294967040 }
 0x17b   :  { %149 = vsyncpa [#allocation3], 1 }
 0x17c   :  { %150 = vsyncpa [#allocation4], 1 }

</bundles_post_ra>
